<compile_context>
chip_gen: v6e
topology: v6e:2x2x1
jax: 0.10.0
libtpu: 0.0.40
codegen_flags: <defaults>
</compile_context>

<pallas_src>
import functools

import jax
import jax.numpy as jnp
from jax.experimental import pallas as pl
from jax.experimental.pallas import tpu as pltpu


STRIP = 512          # lanes processed per in-register strip inside the kernel
MAX_TILE_B = 16384   # max batch tile per grid step (multiple of STRIP)


def _round_up(n, m):
    return ((n + m - 1) // m) * m


def expert_mlp_kernel(x_ref, w1_ref, b1_ref, w2_ref, b2_ref, w3_ref, b3_ref,
                      o_ref, *, n_strips):
    """One batch tile.

    x_ref: [TILE_B, 4]  (natural PyTorch layout, batch in sublanes)
    o_ref: [2, TILE_B]  (lane-dense output, batch in lanes)
    Weights are [out, in]; biases are [out, 1] (broadcast over lanes).
    The tile is processed in STRIP-lane strips so the [24, STRIP] / [48, STRIP]
    intermediates stay in vregs (no VMEM spill/reload between layers).
    """
    w1 = w1_ref[...]
    b1 = b1_ref[...]
    w2 = w2_ref[...]
    b2 = b2_ref[...]
    w3 = w3_ref[...]
    b3 = b3_ref[...]

    # Static (fully unrolled) strip loop: all slice offsets are compile-time
    # constants, so every access is aligned and visible to the scheduler.
    for s in range(n_strips):
        lo = s * STRIP
        x_s = x_ref[pl.ds(lo, STRIP), :]                        # [STRIP, 4]
        # Layer 1 contracts the feature dims of w1 [24,4] and x_s [STRIP,4]
        # (i.e. w1 @ x_s^T) -> lane-dense [24, STRIP]: batch moves to lanes
        # inside the kernel instead of via a wrapper-side transpose pass.
        h1 = jnp.tanh(
            jax.lax.dot_general(
                w1, x_s,
                dimension_numbers=(((1,), (1,)), ((), ())),
                preferred_element_type=jnp.float32,
            ) + b1
        )                                                       # [24, STRIP]
        h2 = jnp.tanh(
            jnp.dot(w2, h1, preferred_element_type=jnp.float32) + b2
        )                                                       # [48, STRIP]
        out = jnp.dot(w3, h2, preferred_element_type=jnp.float32) + b3
        o_ref[:, pl.ds(lo, STRIP)] = out.astype(o_ref.dtype)    # [2, STRIP]


@functools.partial(jax.jit, static_argnames=("max_tile_b",))
def expert_model_forward(x, params, *, max_tile_b=MAX_TILE_B):
    """x: [B, 4] float32 (PyTorch convention).  Returns [B, 2] float32."""
    w1, b1 = params["w1"], params["b1"]
    w2, b2 = params["w2"], params["b2"]
    w3, b3 = params["w3"], params["b3"]

    B = x.shape[0]
    f_in = w1.shape[1]       # 4
    f_out = w3.shape[0]      # 2

    # Adaptive tiling: bound the per-step tile by max_tile_b, keep >= 2 grid
    # steps when the batch allows (shards across v7x's 2 TensorCores), and
    # round the tile to a multiple of STRIP so the in-kernel strip loop is
    # exact.  Tail padding is at most ~one tile for tiny B, < STRIP otherwise.
    n_steps = max(1, -(-B // max_tile_b))
    if n_steps < 2 and B >= 2 * STRIP:
        n_steps = 2
    tile = _round_up(max(1, -(-B // n_steps)), STRIP)
    b_pad = n_steps * tile

    if b_pad != B:
        # Natural-layout zero pad along batch only (no transpose pass).
        x = jnp.pad(x, ((0, b_pad - B), (0, 0)))

    weight_bytes = sum(int(a.size) * a.dtype.itemsize
                       for a in (w1, b1, w2, b2, w3, b3))

    kernel = functools.partial(expert_mlp_kernel, n_strips=tile // STRIP)

    out_t = pl.pallas_call(
        kernel,
        out_shape=jax.ShapeDtypeStruct((f_out, b_pad), x.dtype),
        grid=(n_steps,),
        in_specs=[
            pl.BlockSpec((tile, f_in), lambda i: (i, 0)),    # x tile, natural layout
            pl.BlockSpec(w1.shape, lambda i: (0, 0)),        # resident weights
            pl.BlockSpec(b1.shape, lambda i: (0, 0)),
            pl.BlockSpec(w2.shape, lambda i: (0, 0)),
            pl.BlockSpec(b2.shape, lambda i: (0, 0)),
            pl.BlockSpec(w3.shape, lambda i: (0, 0)),
            pl.BlockSpec(b3.shape, lambda i: (0, 0)),
        ],
        out_specs=pl.BlockSpec((f_out, tile), lambda i: (0, i)),
        compiler_params=pltpu.CompilerParams(
            dimension_semantics=("parallel",),   # batch tiles across TCs (v7x)
            vmem_limit_bytes=32 * 1024 * 1024,   # valid on v7x's 64 MiB VMEM too
        ),
        cost_estimate=pl.CostEstimate(
            flops=2 * (4 * 24 + 24 * 48 + 48 * 2) * b_pad,
            transcendentals=(24 + 48) * b_pad,
            bytes_accessed=(f_in + f_out) * 4 * b_pad + weight_bytes,
        ),
    )(x, w1, b1, w2, b2, w3, b3)

    # Back to the PyTorch [B, 2] convention.  If a downstream consumer can take
    # the lane-dense [2, B] layout directly, drop this slice + transpose.
    return out_t[:, :B].T


def init_params(key):
    """Deterministic init mimicking torch.nn.Linear's U(-1/sqrt(fan_in), +1/sqrt(fan_in)).

    Weights are kept in PyTorch's [out, in] orientation; biases are [out, 1]
    so they broadcast over the lane (batch) dimension inside the kernel.
    """
    dims = [(4, 24), (24, 48), (48, 2)]
    params = {}
    keys = jax.random.split(key, 2 * len(dims))
    for i, (fan_in, fan_out) in enumerate(dims):
        bound = 1.0 / jnp.sqrt(fan_in)
        params[f"w{i+1}"] = jax.random.uniform(
            keys[2 * i], (fan_out, fan_in), jnp.float32, -bound, bound
        )
        params[f"b{i+1}"] = jax.random.uniform(
            keys[2 * i + 1], (fan_out, 1), jnp.float32, -bound, bound
        )
    return params


def reference_forward(x, params):
    """Pure-JAX reference matching PyTorch Linear semantics (y = x W^T + b)."""
    hi = jax.lax.Precision.HIGHEST
    h1 = jnp.tanh(jnp.dot(x, params["w1"].T, precision=hi) + params["b1"].T)
    h2 = jnp.tanh(jnp.dot(h1, params["w2"].T, precision=hi) + params["b2"].T)
    return jnp.dot(h2, params["w3"].T, precision=hi) + params["b3"].T


if __name__ == "__main__":
    key = jax.random.PRNGKey(0)
    pkey, xkey = jax.random.split(key)
    params = init_params(pkey)

    B = 8  # small smoke-test batch (tile adapts down to a single 512-lane strip)
    x = jax.random.normal(xkey, (B, 4), jnp.float32)

    out = expert_model_forward(x, params)
    out = jax.block_until_ready(out)

    ref = reference_forward(x, params)
    assert out.shape == (B, 2), out.shape
    assert jnp.allclose(out, ref, atol=2e-5, rtol=2e-5), "mismatch vs reference"

    print("KERNEL_OK")
</pallas_src>

<mosaic_0001>
module attributes {stable_mosaic.version = 11 : i64} {
  func.func @expert_mlp_kernel(%arg0: i32, %arg1: memref<512x4xf32, #tpu.memory_space<vmem>>, %arg2: memref<24x4xf32, #tpu.memory_space<vmem>>, %arg3: memref<24x1xf32, #tpu.memory_space<vmem>>, %arg4: memref<48x24xf32, #tpu.memory_space<vmem>>, %arg5: memref<48x1xf32, #tpu.memory_space<vmem>>, %arg6: memref<2x48xf32, #tpu.memory_space<vmem>>, %arg7: memref<2x1xf32, #tpu.memory_space<vmem>>, %arg8: memref<2x512xf32, #tpu.memory_space<vmem>>) attributes {dimension_semantics = [#tpu.dimension_semantics<parallel>], iteration_bounds = array<i64: 1>, scalar_prefetch = 0 : i64, scratch_operands = 0 : i64, tpu.core_type = #tpu.core_type<tc>, window_params = [{transform_indices = @transform_0, window_bounds = array<i64: 512, 4>}, {pipeline_mode = #tpu.pipeline_mode<synchronous>, transform_indices = @transform_1, window_bounds = array<i64: 24, 4>}, {pipeline_mode = #tpu.pipeline_mode<synchronous>, transform_indices = @transform_2, window_bounds = array<i64: 24, 1>}, {pipeline_mode = #tpu.pipeline_mode<synchronous>, transform_indices = @transform_3, window_bounds = array<i64: 48, 24>}, {pipeline_mode = #tpu.pipeline_mode<synchronous>, transform_indices = @transform_4, window_bounds = array<i64: 48, 1>}, {pipeline_mode = #tpu.pipeline_mode<synchronous>, transform_indices = @transform_5, window_bounds = array<i64: 2, 48>}, {pipeline_mode = #tpu.pipeline_mode<synchronous>, transform_indices = @transform_6, window_bounds = array<i64: 2, 1>}, {transform_indices = @transform_7, window_bounds = array<i64: 2, 512>}]} {
    %c0 = arith.constant 0 : index
    %c0_0 = arith.constant 0 : index
    %0 = vector.load %arg2[%c0, %c0_0] : memref<24x4xf32, #tpu.memory_space<vmem>>, vector<24x4xf32>
    %c0_1 = arith.constant 0 : index
    %c0_2 = arith.constant 0 : index
    %1 = vector.load %arg3[%c0_1, %c0_2] : memref<24x1xf32, #tpu.memory_space<vmem>>, vector<24x1xf32>
    %c0_3 = arith.constant 0 : index
    %c0_4 = arith.constant 0 : index
    %2 = vector.load %arg4[%c0_3, %c0_4] : memref<48x24xf32, #tpu.memory_space<vmem>>, vector<48x24xf32>
    %c0_5 = arith.constant 0 : index
    %c0_6 = arith.constant 0 : index
    %3 = vector.load %arg5[%c0_5, %c0_6] : memref<48x1xf32, #tpu.memory_space<vmem>>, vector<48x1xf32>
    %c0_7 = arith.constant 0 : index
    %c0_8 = arith.constant 0 : index
    %4 = vector.load %arg6[%c0_7, %c0_8] : memref<2x48xf32, #tpu.memory_space<vmem>>, vector<2x48xf32>
    %c0_9 = arith.constant 0 : index
    %c0_10 = arith.constant 0 : index
    %5 = vector.load %arg7[%c0_9, %c0_10] : memref<2x1xf32, #tpu.memory_space<vmem>>, vector<2x1xf32>
    %c0_11 = arith.constant 0 : index
    %c0_12 = arith.constant 0 : index
    %6 = vector.load %arg1[%c0_11, %c0_12] : memref<512x4xf32, #tpu.memory_space<vmem>>, vector<512x4xf32>
    %cst = arith.constant dense<0.000000e+00> : vector<24x512xf32>
    %7 = tpu.matmul %0, %6, %cst {dimension_numbers = #tpu.dot_dimension_numbers<[1], [1], [0], [0], [0, 0, 1, 0], [], []>} : vector<24x4xf32>, vector<512x4xf32>, vector<24x512xf32> -> vector<24x512xf32>
    %8 = vector.broadcast %1 : vector<24x1xf32> to vector<24x512xf32>
    %9 = arith.addf %7, %8 : vector<24x512xf32>
    %10 = math.tanh %9 : vector<24x512xf32>
    %cst_13 = arith.constant dense<0.000000e+00> : vector<48x512xf32>
    %11 = tpu.matmul %2, %10, %cst_13 {dimension_numbers = #tpu.dot_dimension_numbers<[1], [0], [0], [1], [0, 0, 1, 1], [], []>} : vector<48x24xf32>, vector<24x512xf32>, vector<48x512xf32> -> vector<48x512xf32>
    %12 = vector.broadcast %3 : vector<48x1xf32> to vector<48x512xf32>
    %13 = arith.addf %11, %12 : vector<48x512xf32>
    %14 = math.tanh %13 : vector<48x512xf32>
    %cst_14 = arith.constant dense<0.000000e+00> : vector<2x512xf32>
    %15 = tpu.matmul %4, %14, %cst_14 {dimension_numbers = #tpu.dot_dimension_numbers<[1], [0], [0], [1], [0, 0, 1, 1], [], []>} : vector<2x48xf32>, vector<48x512xf32>, vector<2x512xf32> -> vector<2x512xf32>
    %16 = vector.broadcast %5 : vector<2x1xf32> to vector<2x512xf32>
    %17 = arith.addf %15, %16 : vector<2x512xf32>
    %c0_15 = arith.constant 0 : index
    %c0_16 = arith.constant 0 : index
    %18 = vector.load %arg8[%c0_15, %c0_16] : memref<2x512xf32, #tpu.memory_space<vmem>>, vector<2x512xf32>
    tpu.vector_store %arg8[%c0_15, %c0_16], %17 {strides = array<i32>} : memref<2x512xf32, #tpu.memory_space<vmem>>, vector<2x512xf32>,
    return
  }
  func.func @transform_0(%arg0: i32) -> (i32, i32) {
    %c0_i32 = arith.constant 0 : i32
    %c0_i32_0 = arith.constant 0 : i32
    return %arg0, %c0_i32 : i32, i32
  }
  func.func @transform_1(%arg0: i32) -> (i32, i32) {
    %c0_i32 = arith.constant 0 : i32
    %c0_i32_0 = arith.constant 0 : i32
    %c0_i32_1 = arith.constant 0 : i32
    return %c0_i32, %c0_i32_0 : i32, i32
  }
  func.func @transform_2(%arg0: i32) -> (i32, i32) {
    %c0_i32 = arith.constant 0 : i32
    %c0_i32_0 = arith.constant 0 : i32
    %c0_i32_1 = arith.constant 0 : i32
    return %c0_i32, %c0_i32_0 : i32, i32
  }
  func.func @transform_3(%arg0: i32) -> (i32, i32) {
    %c0_i32 = arith.constant 0 : i32
    %c0_i32_0 = arith.constant 0 : i32
    %c0_i32_1 = arith.constant 0 : i32
    return %c0_i32, %c0_i32_0 : i32, i32
  }
  func.func @transform_4(%arg0: i32) -> (i32, i32) {
    %c0_i32 = arith.constant 0 : i32
    %c0_i32_0 = arith.constant 0 : i32
    %c0_i32_1 = arith.constant 0 : i32
    return %c0_i32, %c0_i32_0 : i32, i32
  }
  func.func @transform_5(%arg0: i32) -> (i32, i32) {
    %c0_i32 = arith.constant 0 : i32
    %c0_i32_0 = arith.constant 0 : i32
    %c0_i32_1 = arith.constant 0 : i32
    return %c0_i32, %c0_i32_0 : i32, i32
  }
  func.func @transform_6(%arg0: i32) -> (i32, i32) {
    %c0_i32 = arith.constant 0 : i32
    %c0_i32_0 = arith.constant 0 : i32
    %c0_i32_1 = arith.constant 0 : i32
    return %c0_i32, %c0_i32_0 : i32, i32
  }
  func.func @transform_7(%arg0: i32) -> (i32, i32) {
    %c0_i32 = arith.constant 0 : i32
    %c0_i32_0 = arith.constant 0 : i32
    return %c0_i32, %arg0 : i32, i32
  }
}

</mosaic_0001>

<bundles_post_ra>
// kernel: expert_model_forward.1
= control target key start
LH: loop header
LB: loop body
LE: loop exit
PB: predicated region body
PF: predicated region fallthrough
CT: control target
= control target key end

     0   :  { %vm125_vm0 = vcmask 31744   ;;  %v1195_v3 = vmov 0   ;;  %vm535_vm1 = vcmask 195584   ;;  %vm785_vm2 = vcmask 392192   ;;  %s1619_s0 = inlined_call_operand.vmem [shape: f32[512,4], index: 0, kind: input, shape index: {}]   ;;  %s1620_s1 = inlined_call_operand.vmem [shape: f32[24,4], index: 1, kind: input, shape index: {}]   ;;  %s1621_s2 = inlined_call_operand.vmem [shape: f32[24,1], index: 2, kind: input, shape index: {}]   ;;  %s1622_s4 = inlined_call_operand.vmem [shape: f32[48,1], index: 4, kind: input, shape index: {}]   ;;  %s1623_s6 = inlined_call_operand.vmem [shape: f32[2,1], index: 6, kind: input, shape index: {}]   ;;  %s1624_s3 = inlined_call_operand.vmem [shape: f32[48,24], index: 3, kind: input, shape index: {}]   ;;  %s1625_s5 = inlined_call_operand.vmem [shape: f32[2,48], index: 5, kind: input, shape index: {}]   ;;  %s1626_s7 = inlined_call_operand.vmem [shape: f32[2,512], index: 7, kind: output, shape index: {}]  }
   0x1   :  { %v77_v0 = vld [vmem:[%s1619_s0 + $0xf8] sm:$0xff]  ;;  %1121 = vset.pattern.permute.xlu0 %v1195_v3  ;;  %1122 = vset.pattern.permute.xlu1 %v1195_v3  ;;  %v76_v5 = vld [vmem:[%s1619_s0 + $0xf0] sm:$0xff]  ;;  %v75_v9 = vld [vmem:[%s1619_s0 + $0xe8] sm:$0xff] }
   0x2   :  { %v109_v1 = vld [vmem:[%s1619_s0 + $0x1f8] sm:$0xff]  ;;  %1042 = vmatprep.subr.msk.mxu0 %vm125_vm0, %v77_v0  ;;  %v108_v6 = vld [vmem:[%s1619_s0 + $0x1f0] sm:$0xff]  ;;  %v107_v10 = vld [vmem:[%s1619_s0 + $0x1e8] sm:$0xff] }
   0x3   :  { %v61_v2 = vld [vmem:[%s1619_s0 + $0x78] sm:$0xff]  ;;  %1080 = vmatprep.subr.msk.mxu1 %vm125_vm0, %v109_v1  ;;  %v60_v7 = vld [vmem:[%s1619_s0 + $0x70] sm:$0xff]  ;;  %v59_v11 = vld [vmem:[%s1619_s0 + $0x68] sm:$0xff] }
   0x4   :  { %v93_v4 = vld [vmem:[%s1619_s0 + $0x178] sm:$0xff]  ;;  %1043 = vmatpush3.xpose.msk.msra.mxu0 %vm125_vm0, %v61_v2  ;;  %v92_v8 = vld [vmem:[%s1619_s0 + $0x170] sm:$0xff]  ;;  %v91_v12 = vld [vmem:[%s1619_s0 + $0x168] sm:$0xff] }
   0x5   :  { %1081 = vmatpush3.xpose.msk.msra.mxu1 %vm125_vm0, %v93_v4  ;;  %1044 = vmatprep.subr.msk.mxu0 %vm125_vm0, %v76_v5  ;;  %v74_v13 = vld [vmem:[%s1619_s0 + $0xe0] sm:$0xff]  ;;  %v73_v17 = vld [vmem:[%s1619_s0 + $0xd8] sm:$0xff]  ;;  %v72_v21 = vld [vmem:[%s1619_s0 + $0xd0] sm:$0xff] }
   0x6   :  { %1082 = vmatprep.subr.msk.mxu1 %vm125_vm0, %v108_v6  ;;  %v106_v14 = vld [vmem:[%s1619_s0 + $0x1e0] sm:$0xff]  ;;  %v105_v18 = vld [vmem:[%s1619_s0 + $0x1d8] sm:$0xff]  ;;  %v104_v22 = vld [vmem:[%s1619_s0 + $0x1d0] sm:$0xff] }
   0x7   :  { %v58_v15 = vld [vmem:[%s1619_s0 + $0x60] sm:$0xff]  ;;  %v57_v19 = vld [vmem:[%s1619_s0 + $0x58] sm:$0xff]  ;;  %v56_v23 = vld [vmem:[%s1619_s0 + $0x50] sm:$0xff] }
   0x8   :  { %1045 = vmatpush3.xpose.msk.msra.mxu0 %vm125_vm0, %v60_v7  ;;  %v90_v16 = vld [vmem:[%s1619_s0 + $0x160] sm:$0xff]  ;;  %v89_v20 = vld [vmem:[%s1619_s0 + $0x158] sm:$0xff]  ;;  %v88_v24 = vld [vmem:[%s1619_s0 + $0x150] sm:$0xff] }
   0x9   :  { %1083 = vmatpush3.xpose.msk.msra.mxu1 %vm125_vm0, %v92_v8  ;;  %1046 = vmatprep.subr.msk.mxu0 %vm125_vm0, %v75_v9  ;;  %v71_v25 = vld [vmem:[%s1619_s0 + $0xc8] sm:$0xff]  ;;  %v1341_v27 = vld [vmem:[%s1620_s1] sm:$0xff]  ;;  %v31_v28 = vld [vmem:[%s1621_s2 + $0x10] sm:$0xff] }
   0xa   :  { %1084 = vmatprep.subr.msk.mxu1 %vm125_vm0, %v107_v10  ;;  %v103_v26 = vld [vmem:[%s1619_s0 + $0x1c8] sm:$0xff]  ;;  %v29_v31 = vld [vmem:[%s1621_s2] sm:$0xff]  ;;  %1074 = vmatprep.mubr.msk.f32.mxu0 %vm125_vm0, %v1341_v27  ;;  %v69_v38 = vld [vmem:[%s1619_s0 + $0xb8] sm:$0xff] }
   0xb   :  { %v55_v29 = vld [vmem:[%s1619_s0 + $0x48] sm:$0xff]  ;;  %v70_v32 = vld [vmem:[%s1619_s0 + $0xc0] sm:$0xff]  ;;  %1112 = vmatprep.mubr.msk.f32.mxu1 %vm125_vm0, %v1341_v27  ;;  %122 = vperm.xlu0 %1121, %v31_v28   ;;  %v101_v39 = vld [vmem:[%s1619_s0 + $0x1b8] sm:$0xff] }
   0xc   :  { %1047 = vmatpush3.xpose.msk.msra.mxu0 %vm125_vm0, %v59_v11  ;;  %v87_v30 = vld [vmem:[%s1619_s0 + $0x148] sm:$0xff]  ;;  %v102_v33 = vld [vmem:[%s1619_s0 + $0x1c0] sm:$0xff]  ;;  %112 = vperm.xlu1 %1122, %v29_v31   ;;  %v41_v41 = vld [vmem:[%s1622_s4 + $0x18] sm:$0xff] }
   0xd   :  { %1085 = vmatpush3.xpose.msk.msra.mxu1 %vm125_vm0, %v91_v12  ;;  %1048 = vmatprep.subr.msk.mxu0 %vm125_vm0, %v74_v13  ;;  %v30_v34 = vld [vmem:[%s1621_s2 + $0x8] sm:$0xff]  ;;  %v54_v36 = vld [vmem:[%s1619_s0 + $0x40] sm:$0xff]  ;;  %v53_v42 = vld [vmem:[%s1619_s0 + $0x38] sm:$0xff] }
   0xe   :  { %1086 = vmatprep.subr.msk.mxu1 %vm125_vm0, %v106_v14  ;;  %v43_v35 = vld [vmem:[%s1622_s4 + $0x28] sm:$0xff]  ;;  %v86_v37 = vld [vmem:[%s1619_s0 + $0x140] sm:$0xff]  ;;  %v85_v43 = vld [vmem:[%s1619_s0 + $0x138] sm:$0xff]  ;;  %v1196_v14 = vmov 0.0  }
   0xf   :  { %117 = vperm.xlu0 %1121, %v30_v34   ;;  %v42_v40 = vld [vmem:[%s1622_s4 + $0x20] sm:$0xff]  ;;  %v68_v44 = vld [vmem:[%s1619_s0 + $0xb0] sm:$0xff]  ;;  %v39_v47 = vld [vmem:[%s1622_s4 + $0x8] sm:$0xff] }
  0x10   :  { %1049 = vmatpush3.xpose.msk.msra.mxu0 %vm125_vm0, %v58_v15  ;;  %532 = vperm.xlu1 %1122, %v43_v35   ;;  %v100_v45 = vld [vmem:[%s1619_s0 + $0x1b0] sm:$0xff]  ;;  %v67_v50 = vld [vmem:[%s1619_s0 + $0xa8] sm:$0xff]  ;;  %v38_v52 = vld [vmem:[%s1622_s4] sm:$0xff] }
  0x11   :  { %1087 = vmatpush3.xpose.msk.msra.mxu1 %vm125_vm0, %v90_v16  ;;  %1050 = vmatprep.subr.msk.mxu0 %vm125_vm0, %v73_v17  ;;  %v40_v46 = vld [vmem:[%s1622_s4 + $0x10] sm:$0xff]  ;;  %v99_v51 = vld [vmem:[%s1619_s0 + $0x1a8] sm:$0xff]  ;;  %v45_v53 = vld [vmem:[%s1623_s6] sm:$0x3] }
  0x12   :  { %1088 = vmatprep.subr.msk.mxu1 %vm125_vm0, %v105_v18  ;;  %v52_v48 = vld [vmem:[%s1619_s0 + $0x30] sm:$0xff]  ;;  %v51_v54 = vld [vmem:[%s1619_s0 + $0x28] sm:$0xff]  ;;  %v66_v56 = vld [vmem:[%s1619_s0 + $0xa0] sm:$0xff] }
  0x13   :  { %527 = vperm.xlu0 %1121, %v42_v40   ;;  %v84_v49 = vld [vmem:[%s1619_s0 + $0x130] sm:$0xff]  ;;  %v83_v55 = vld [vmem:[%s1619_s0 + $0x128] sm:$0xff]  ;;  %v98_v57 = vld [vmem:[%s1619_s0 + $0x1a0] sm:$0xff] }
  0x14   :  { %1051 = vmatpush3.xpose.msk.msra.mxu0 %vm125_vm0, %v57_v19  ;;  %522 = vperm.xlu1 %1122, %v41_v41   ;;  %v50_v58 = vld [vmem:[%s1619_s0 + $0x20] sm:$0xff]  ;;  %v65_v60 = vld [vmem:[%s1619_s0 + $0x98] sm:$0xff]  ;;  %v64_v0 = vld [vmem:[%s1619_s0 + $0x90] sm:$0xff] }
  0x15   :  { %1089 = vmatpush3.xpose.msk.msra.mxu1 %vm125_vm0, %v89_v20  ;;  %1052 = vmatprep.subr.msk.mxu0 %vm125_vm0, %v72_v21  ;;  %v82_v59 = vld [vmem:[%s1619_s0 + $0x120] sm:$0xff]  ;;  %v97_v61 = vld [vmem:[%s1619_s0 + $0x198] sm:$0xff]  ;;  %v96_v1 = vld [vmem:[%s1619_s0 + $0x190] sm:$0xff] }
  0x16   :  { %1090 = vmatprep.subr.msk.mxu1 %vm125_vm0, %v104_v22  ;;  %v49_v62 = vld [vmem:[%s1619_s0 + $0x18] sm:$0xff]  ;;  %v48_v2 = vld [vmem:[%s1619_s0 + $0x10] sm:$0xff]  ;;  %v63_v4 = vld [vmem:[%s1619_s0 + $0x88] sm:$0xff] }
  0x17   :  { %517 = vperm.xlu0 %1121, %v40_v46   ;;  %v81_v63 = vld [vmem:[%s1619_s0 + $0x118] sm:$0xff]  ;;  %v80_v3 = vld [vmem:[%s1619_s0 + $0x110] sm:$0xff]  ;;  %v95_v5 = vld [vmem:[%s1619_s0 + $0x188] sm:$0xff] }
  0x18   :  { %1053 = vmatpush3.xpose.msk.msra.mxu0 %vm125_vm0, %v56_v23  ;;  %512 = vperm.xlu1 %1122, %v39_v47   ;;  %v47_v6 = vld [vmem:[%s1619_s0 + $0x8] sm:$0xff]  ;;  %v62_v8 = vld [vmem:[%s1619_s0 + $0x80] sm:$0xff]  ;;  %v28_v13 = vld [vmem:[%s1620_s1 + $0x10] sm:$0xff] }
  0x19   :  { %1091 = vmatpush3.xpose.msk.msra.mxu1 %vm125_vm0, %v88_v24  ;;  %1054 = vmatprep.subr.msk.mxu0 %vm125_vm0, %v71_v25  ;;  %v79_v7 = vld [vmem:[%s1619_s0 + $0x108] sm:$0xff]  ;;  %v94_v9 = vld [vmem:[%s1619_s0 + $0x180] sm:$0xff] }
  0x1a   :  { %1092 = vmatprep.subr.msk.mxu1 %vm125_vm0, %v103_v26  ;;  %v46_v10 = vld [vmem:[%s1619_s0] sm:$0xff]  ;;  %v27_v12 = vld [vmem:[%s1620_s1 + $0x8] sm:$0xff] }
  0x1b   :  { %507 = vperm.xlu0 %1121, %v38_v52   ;;  %v78_v11 = vld [vmem:[%s1619_s0 + $0x100] sm:$0xff] }
  0x1c   :  { %1055 = vmatpush3.xpose.msk.msra.mxu0 %vm125_vm0, %v55_v29  ;;  %782 = vperm.xlu1 %1122, %v45_v53   ;;  %v32_v52 = vld [vmem:[%s1624_s3] sm:$0xff] }
  0x1d   :  { %1093 = vmatpush3.xpose.msk.msra.mxu1 %vm125_vm0, %v87_v30  ;;  %1056 = vmatprep.subr.msk.mxu0 %vm125_vm0, %v70_v32 }
  0x1e   :  { %1094 = vmatprep.subr.msk.mxu1 %vm125_vm0, %v102_v33 }
  0x20   :  { %1057 = vmatpush3.xpose.msk.msra.mxu0 %vm125_vm0, %v54_v36 }
  0x21   :  { %1095 = vmatpush3.xpose.msk.msra.mxu1 %vm125_vm0, %v86_v37  ;;  %1058 = vmatprep.subr.msk.mxu0 %vm125_vm0, %v69_v38 }
  0x22   :  { %1096 = vmatprep.subr.msk.mxu1 %vm125_vm0, %v101_v39 }
  0x24   :  { %1059 = vmatpush3.xpose.msk.msra.mxu0 %vm125_vm0, %v53_v42 }
  0x25   :  { %1097 = vmatpush3.xpose.msk.msra.mxu1 %vm125_vm0, %v85_v43  ;;  %1060 = vmatprep.subr.msk.mxu0 %vm125_vm0, %v68_v44 }
  0x26   :  { %1098 = vmatprep.subr.msk.mxu1 %vm125_vm0, %v100_v45 }
  0x28   :  { %1061 = vmatpush3.xpose.msk.msra.mxu0 %vm125_vm0, %v52_v48 }
  0x29   :  { %1099 = vmatpush3.xpose.msk.msra.mxu1 %vm125_vm0, %v84_v49  ;;  %1062 = vmatprep.subr.msk.mxu0 %vm125_vm0, %v67_v50 }
  0x2a   :  { %1100 = vmatprep.subr.msk.mxu1 %vm125_vm0, %v99_v51 }
  0x2c   :  { %1063 = vmatpush3.xpose.msk.msra.mxu0 %vm125_vm0, %v51_v54 }
  0x2d   :  { %1101 = vmatpush3.xpose.msk.msra.mxu1 %vm125_vm0, %v83_v55  ;;  %1064 = vmatprep.subr.msk.mxu0 %vm125_vm0, %v66_v56  ;;  %v33_v55 = vld [vmem:[%s1624_s3 + $0x8] sm:$0xff]  ;;  %v34_v56 = vld [vmem:[%s1624_s3 + $0x10] sm:$0xff] }
  0x2e   :  { %1102 = vmatprep.subr.msk.mxu1 %vm125_vm0, %v98_v57  ;;  %v35_v57 = vld [vmem:[%s1624_s3 + $0x18] sm:$0xff] }
  0x30   :  { %1065 = vmatpush3.xpose.msk.msra.mxu0 %vm125_vm0, %v50_v58  ;;  %v36_v58 = vld [vmem:[%s1624_s3 + $0x20] sm:$0xff] }
  0x31   :  { %1103 = vmatpush3.xpose.msk.msra.mxu1 %vm125_vm0, %v82_v59  ;;  %1066 = vmatprep.subr.msk.mxu0 %vm125_vm0, %v65_v60  ;;  %v37_v59 = vld [vmem:[%s1624_s3 + $0x28] sm:$0xff] }
  0x32   :  { %1104 = vmatprep.subr.msk.mxu1 %vm125_vm0, %v97_v61 }
  0x34   :  { %1067 = vmatpush3.xpose.msk.msra.mxu0 %vm125_vm0, %v49_v62 }
  0x35   :  { %1105 = vmatpush3.xpose.msk.msra.mxu1 %vm125_vm0, %v81_v63  ;;  %1068 = vmatprep.subr.msk.mxu0 %vm125_vm0, %v64_v0 }
  0x36   :  { %1106 = vmatprep.subr.msk.mxu1 %vm125_vm0, %v96_v1 }
  0x38   :  { %1069 = vmatpush3.xpose.msk.msra.mxu0 %vm125_vm0, %v48_v2 }
  0x39   :  { %1107 = vmatpush3.xpose.msk.msra.mxu1 %vm125_vm0, %v80_v3  ;;  %1070 = vmatprep.subr.msk.mxu0 %vm125_vm0, %v63_v4 }
  0x3a   :  { %1108 = vmatprep.subr.msk.mxu1 %vm125_vm0, %v95_v5 }
  0x3c   :  { %1071 = vmatpush3.xpose.msk.msra.mxu0 %vm125_vm0, %v47_v6 }
  0x3d   :  { %1109 = vmatpush3.xpose.msk.msra.mxu1 %vm125_vm0, %v79_v7  ;;  %1072 = vmatprep.subr.msk.mxu0 %vm125_vm0, %v62_v8 }
  0x3e   :  { %1110 = vmatprep.subr.msk.mxu1 %vm125_vm0, %v94_v9 }
  0x40   :  { %1073 = vmatpush3.xpose.msk.msra.mxu0 %vm125_vm0, %v46_v10 }
  0x41   :  { %1111 = vmatpush3.xpose.msk.msra.mxu1 %vm125_vm0, %v78_v11 }
  0x43   :  { %1075 = vmatmul.mubr.msk.f32.vlgmr.msra.gmra.mxu0 %vm125_vm0, %v1341_v27 }
  0x44   :  { %1113 = vmatmul.mubr.msk.f32.vlgmr.msra.gmra.mxu1 %vm125_vm0, %v1341_v27  ;;  %1076 = vmatprep.mubr.msk.f32.mxu0 %vm125_vm0, %v27_v12 }
  0x45   :  { %1114 = vmatprep.mubr.msk.f32.mxu1 %vm125_vm0, %v27_v12 }
  0x47   :  { %1077 = vmatmul.mubr.msk.f32.gmra.mxu0 %vm125_vm0, %v27_v12 }
  0x48   :  { %1115 = vmatmul.mubr.msk.f32.gmra.mxu1 %vm125_vm0, %v27_v12  ;;  %1078 = vmatprep.mubr.msk.f32.mxu0 %vm125_vm0, %v28_v13 }
  0x49   :  { %1116 = vmatprep.mubr.msk.f32.mxu1 %vm125_vm0, %v28_v13 }
  0x4b   :  { %1079 = vmatmul.mubr.msk.f32.gmra.mxu0 %vm125_vm0, %v28_v13 }
  0x4c   :  { %1117 = vmatmul.mubr.msk.f32.gmra.mxu1 %vm125_vm0, %v28_v13  ;;  %618 = vmatprep.mubr.f32.mxu0 %v1196_v14 }
  0x4d   :  { %719 = vmatprep.mubr.f32.mxu1 %v1196_v14 }
  0x86   :  { %v123_v15 = vpop.permute.xlu0 %122 }
  0x87   :  { %v113_v20 = vpop.permute.xlu1 %112 }
  0x8a   :  { %v118_v24 = vpop.permute.xlu0 %117 }
  0x8b   :  { %v533_v61 = vpop.permute.xlu1 %532 }
  0x8e   :  { %v528_v60 = vpop.permute.xlu0 %527 }
  0x8f   :  { %v523_v4 = vpop.permute.xlu1 %522 }
  0x92   :  { %v518_v1 = vpop.permute.xlu0 %517 }
  0x93   :  { %v513_v13 = vpop.permute.xlu1 %512 }
  0x96   :  { %v1601_v9 = vpop.permute.xlu0 %507 }
 0x103   :  { %v393_v16 = vpop.f32.mrf.mxu0 }
 0x104   :  { %v476_v17 = vpop.f32.mrf.mxu1  ;;  %v394_v21 = vadd.f32 %v393_v16, %v113_v20 }
 0x105   :  { %v395_v18 = vpop.f32.mrf.mxu0  ;;  %v477_v41 = vadd.f32 %v476_v17, %v113_v20 }
 0x106   :  { %v478_v19 = vpop.f32.mrf.mxu1  ;;  %v396_v25 = vadd.f32 %v395_v18, %v113_v20  ;;  %1123 = vtanh.f32 %v394_v21 }
 0x107   :  { %v399_v22 = vpop.f32.mrf.mxu0  ;;  %v479_v40 = vadd.f32 %v478_v19, %v113_v20 }
 0x108   :  { %v482_v23 = vpop.f32.mrf.mxu1  ;;  %v400_v26 = vadd.f32 %v399_v22, %v118_v24  ;;  %1125 = vtanh.f32 %v396_v25 }
 0x109   :  { %v401_v27 = vpop.f32.mrf.mxu0  ;;  %v483_v39 = vadd.f32 %v482_v23, %v118_v24 }
 0x10a   :  { %v484_v28 = vpop.f32.mrf.mxu1  ;;  %v402_v29 = vadd.f32 %v401_v27, %v118_v24  ;;  %1127 = vtanh.f32 %v400_v26 }
 0x10b   :  { %v405_v30 = vpop.f32.mrf.mxu0  ;;  %v485_v38 = vadd.f32 %v484_v28, %v118_v24 }
 0x10c   :  { %v488_v31 = vpop.f32.mrf.mxu1  ;;  %v406_v32 = vadd.f32 %v405_v30, %v123_v15  ;;  %1129 = vtanh.f32 %v402_v29 }
 0x10d   :  { %v407_v33 = vpop.f32.mrf.mxu0  ;;  %v489_v35 = vadd.f32 %v488_v31, %v123_v15 }
 0x10e   :  { %v490_v34 = vpop.f32.mrf.mxu1  ;;  %v408_v36 = vadd.f32 %v407_v33, %v123_v15  ;;  %1131 = vtanh.f32 %v406_v32 }
 0x10f   :  { %v491_v37 = vadd.f32 %v490_v34, %v123_v15 }
 0x110   :  { %1133 = vtanh.f32 %v408_v36 }
 0x111   :  { %1135 = vtanh.f32 %v491_v37 }
 0x112   :  { %1137 = vtanh.f32 %v489_v35 }
 0x113   :  { %1139 = vtanh.f32 %v485_v38  ;;  %v1124_v42 = vpop.eup %1123 }
 0x114   :  { %1141 = vtanh.f32 %v483_v39 }
 0x115   :  { %1143 = vtanh.f32 %v479_v40  ;;  %v1126_v43 = vpop.eup %1125 }
 0x116   :  { %1145 = vtanh.f32 %v477_v41 }
 0x117   :  { %v1128_v44 = vpop.eup %1127 }
 0x119   :  { %v1130_v45 = vpop.eup %1129 }
 0x11b   :  { %v1132_v46 = vpop.eup %1131 }
 0x11d   :  { %v1134_v47 = vpop.eup %1133 }
 0x11e   :  { %v1136_v48 = vpop.eup %1135  ;;  %580 = vmatprep.subr.mxu0 %v1134_v47 }
 0x11f   :  { %v1138_v49 = vpop.eup %1137  ;;  %681 = vmatprep.subr.mxu1 %v1136_v48  ;;  %581 = vmatpush1.msra.mxu0 %v1132_v46 }
 0x120   :  { %v1140_v50 = vpop.eup %1139  ;;  %682 = vmatpush1.msra.mxu1 %v1138_v49  ;;  %582 = vmatprep.subr.mxu0 %v1130_v45 }
 0x121   :  { %v1142_v51 = vpop.eup %1141  ;;  %683 = vmatprep.subr.mxu1 %v1140_v50  ;;  %583 = vmatpush1.msra.mxu0 %v1128_v44 }
 0x122   :  { %v1144_v53 = vpop.eup %1143  ;;  %684 = vmatpush1.msra.mxu1 %v1142_v51  ;;  %584 = vmatprep.subr.mxu0 %v1126_v43 }
 0x123   :  { %v1146_v54 = vpop.eup %1145  ;;  %685 = vmatprep.subr.mxu1 %v1144_v53  ;;  %585 = vmatpush1.msra.mxu0 %v1124_v42 }
 0x124   :  { %686 = vmatpush1.msra.mxu1 %v1146_v54  ;;  %1028 = vmatmul.mubr.msk.f32.vlgmr.msra.gmra.mxu0 %vm535_vm1, %v32_v52 }
 0x125   :  { %1034 = vmatmul.mubr.msk.f32.vlgmr.msra.gmra.mxu1 %vm535_vm1, %v32_v52  ;;  %624 = vmatprep.mubr.f32.mxu0 %v1196_v14 }
 0x126   :  { %725 = vmatprep.mubr.f32.mxu1 %v1196_v14 }
 0x128   :  { %1029 = vmatmul.mubr.msk.f32.gmra.mxu0 %vm535_vm1, %v33_v55 }
 0x129   :  { %1035 = vmatmul.mubr.msk.f32.gmra.mxu1 %vm535_vm1, %v33_v55  ;;  %630 = vmatprep.mubr.f32.mxu0 %v1196_v14 }
 0x12a   :  { %731 = vmatprep.mubr.f32.mxu1 %v1196_v14 }
 0x12c   :  { %1030 = vmatmul.mubr.msk.f32.gmra.mxu0 %vm535_vm1, %v34_v56 }
 0x12d   :  { %1036 = vmatmul.mubr.msk.f32.gmra.mxu1 %vm535_vm1, %v34_v56  ;;  %636 = vmatprep.mubr.f32.mxu0 %v1196_v14 }
 0x12e   :  { %737 = vmatprep.mubr.f32.mxu1 %v1196_v14 }
 0x130   :  { %1031 = vmatmul.mubr.msk.f32.gmra.mxu0 %vm535_vm1, %v35_v57 }
 0x131   :  { %1037 = vmatmul.mubr.msk.f32.gmra.mxu1 %vm535_vm1, %v35_v57  ;;  %642 = vmatprep.mubr.f32.mxu0 %v1196_v14 }
 0x132   :  { %743 = vmatprep.mubr.f32.mxu1 %v1196_v14 }
 0x134   :  { %1032 = vmatmul.mubr.msk.f32.gmra.mxu0 %vm535_vm1, %v36_v58 }
 0x135   :  { %1038 = vmatmul.mubr.msk.f32.gmra.mxu1 %vm535_vm1, %v36_v58  ;;  %648 = vmatprep.mubr.f32.mxu0 %v1196_v14 }
 0x136   :  { %749 = vmatprep.mubr.f32.mxu1 %v1196_v14 }
 0x138   :  { %1033 = vmatmul.mubr.msk.f32.gmra.mxu0 %vm535_vm1, %v37_v59 }
 0x139   :  { %1039 = vmatmul.mubr.msk.f32.gmra.mxu1 %vm535_vm1, %v37_v59  ;;  %853 = vmatprep.mubr.f32.mxu0 %v1196_v14 }
 0x13a   :  { %924 = vmatprep.mubr.f32.mxu1 %v1196_v14 }
 0x1e4   :  { %v620_v62 = vpop.f32.mrf.mxu0 }
 0x1e5   :  { %v1595_v63 = vpop.f32.mrf.mxu1  ;;  %v621_v11 = vadd.f32 %v620_v62, %v1601_v9 }
 0x1e6   :  { %v622_v0 = vpop.f32.mrf.mxu0  ;;  %v722_v56 = vadd.f32 %v1595_v63, %v1601_v9 }
 0x1e7   :  { %v1597_v2 = vpop.f32.mrf.mxu1  ;;  %v623_v14 = vadd.f32 %v622_v0, %v1601_v9  ;;  %1147 = vtanh.f32 %v621_v11  ;;  %v1197_v11 = vmov 1983009808  }
 0x1e8   :  { %v626_v3 = vpop.f32.mrf.mxu0  ;;  %v724_v54 = vadd.f32 %v1597_v2, %v1601_v9 }
 0x1e9   :  { %v1599_v5 = vpop.f32.mrf.mxu1  ;;  %v627_v16 = vadd.f32 %v626_v3, %v513_v13  ;;  %1149 = vtanh.f32 %v623_v14 }
 0x1ea   :  { %v628_v6 = vpop.f32.mrf.mxu0  ;;  %v728_v52 = vadd.f32 %v1599_v5, %v513_v13 }
 0x1eb   :  { %v729_v7 = vpop.f32.mrf.mxu1  ;;  %v629_v18 = vadd.f32 %v628_v6, %v513_v13  ;;  %1151 = vtanh.f32 %v627_v16 }
 0x1ec   :  { %v632_v8 = vpop.f32.mrf.mxu0  ;;  %v730_v50 = vadd.f32 %v729_v7, %v513_v13  ;;  %v940_v13 = vlaneseq }
 0x1ed   :  { %v733_v10 = vpop.f32.mrf.mxu1  ;;  %v633_v20 = vadd.f32 %v632_v8, %v518_v1  ;;  %1153 = vtanh.f32 %v629_v18  ;;  %v44_v8 = vld [vmem:[%s1625_s5] sm:$0x3]  ;;  %v783_v18 = vpop.permute.xlu1 %782 }
 0x1ee   :  { %v634_v12 = vpop.f32.mrf.mxu0  ;;  %v734_v48 = vadd.f32 %v733_v10, %v518_v1 }
 0x1ef   :  { %v735_v15 = vpop.f32.mrf.mxu1  ;;  %v635_v22 = vadd.f32 %v634_v12, %v518_v1  ;;  %1155 = vtanh.f32 %v633_v20  ;;  %v938_v12 = vunpack.c.l.s4 %v1197_v11 }
 0x1f0   :  { %v638_v17 = vpop.f32.mrf.mxu0  ;;  %v736_v46 = vadd.f32 %v735_v15, %v518_v1  ;;  %v941_v15 = vshrl.u32 %v940_v13, 7 }
 0x1f1   :  { %v739_v19 = vpop.f32.mrf.mxu1  ;;  %v639_v24 = vadd.f32 %v638_v17, %v523_v4  ;;  %1157 = vtanh.f32 %v635_v22  ;;  %v939_v14 = vunpack.c.0.s8 %v938_v12 }
 0x1f2   :  { %v640_v21 = vpop.f32.mrf.mxu0  ;;  %v740_v44 = vadd.f32 %v739_v19, %v523_v4 }
 0x1f3   :  { %v741_v23 = vpop.f32.mrf.mxu1  ;;  %v641_v26 = vadd.f32 %v640_v21, %v523_v4  ;;  %1159 = vtanh.f32 %v639_v24  ;;  %v942_v22 = vsub.s32 %v939_v14, %v941_v15 }
 0x1f4   :  { %v644_v25 = vpop.f32.mrf.mxu0  ;;  %v742_v42 = vadd.f32 %v741_v23, %v523_v4  ;;  %v1605_v43 = vpop.eup %1147 }
 0x1f5   :  { %v745_v27 = vpop.f32.mrf.mxu1  ;;  %v645_v28 = vadd.f32 %v644_v25, %v528_v60  ;;  %1161 = vtanh.f32 %v641_v26 }
 0x1f6   :  { %v646_v29 = vpop.f32.mrf.mxu0  ;;  %v746_v41 = vadd.f32 %v745_v27, %v528_v60  ;;  %v1150_v45 = vpop.eup %1149 }
 0x1f7   :  { %v647_v30 = vadd.f32 %v646_v29, %v528_v60  ;;  %v747_v31 = vpop.f32.mrf.mxu1  ;;  %1163 = vtanh.f32 %v645_v28 }
 0x1f8   :  { %v650_v32 = vpop.f32.mrf.mxu0  ;;  %v748_v39 = vadd.f32 %v747_v31, %v528_v60  ;;  %v1152_v47 = vpop.eup %1151 }
 0x1f9   :  { %v651_v33 = vadd.f32 %v650_v32, %v533_v61  ;;  %v751_v34 = vpop.f32.mrf.mxu1  ;;  %1165 = vtanh.f32 %v647_v30 }
 0x1fa   :  { %v652_v35 = vpop.f32.mrf.mxu0  ;;  %v752_v36 = vadd.f32 %v751_v34, %v533_v61  ;;  %v1154_v49 = vpop.eup %1153 }
 0x1fb   :  { %v653_v37 = vadd.f32 %v652_v35, %v533_v61  ;;  %v753_v38 = vpop.f32.mrf.mxu1  ;;  %1167 = vtanh.f32 %v651_v33 }
 0x1fc   :  { %v754_v40 = vadd.f32 %v753_v38, %v533_v61  ;;  %v1156_v51 = vpop.eup %1155 }
 0x1fd   :  { %1169 = vtanh.f32 %v653_v37 }
 0x1fe   :  { %1171 = vtanh.f32 %v754_v40  ;;  %v1158_v53 = vpop.eup %1157 }
 0x1ff   :  { %1173 = vtanh.f32 %v752_v36 }
 0x200   :  { %1175 = vtanh.f32 %v748_v39  ;;  %v1160_v55 = vpop.eup %1159 }
 0x201   :  { %1177 = vtanh.f32 %v746_v41 }
 0x202   :  { %1179 = vtanh.f32 %v742_v42  ;;  %v1162_v57 = vpop.eup %1161 }
 0x203   :  { %1181 = vtanh.f32 %v740_v44 }
 0x204   :  { %1183 = vtanh.f32 %v736_v46  ;;  %v1164_v58 = vpop.eup %1163 }
 0x205   :  { %1185 = vtanh.f32 %v734_v48 }
 0x206   :  { %1187 = vtanh.f32 %v730_v50  ;;  %v1166_v59 = vpop.eup %1165 }
 0x207   :  { %1189 = vtanh.f32 %v728_v52 }
 0x208   :  { %1191 = vtanh.f32 %v724_v54  ;;  %v1168_v60 = vpop.eup %1167 }
 0x209   :  { %1193 = vtanh.f32 %v722_v56 }
 0x20a   :  { %v1170_v61 = vpop.eup %1169 }
 0x20b   :  { %v1172_v62 = vpop.eup %1171  ;;  %809 = vmatprep.subr.mxu0 %v1170_v61 }
 0x20c   :  { %v1174_v0 = vpop.eup %1173  ;;  %880 = vmatprep.subr.mxu1 %v1172_v62  ;;  %810 = vmatpush1.msra.mxu0 %v1168_v60 }
 0x20d   :  { %v1176_v1 = vpop.eup %1175  ;;  %881 = vmatpush1.msra.mxu1 %v1174_v0  ;;  %811 = vmatprep.subr.mxu0 %v1166_v59 }
 0x20e   :  { %v1178_v2 = vpop.eup %1177  ;;  %882 = vmatprep.subr.mxu1 %v1176_v1  ;;  %812 = vmatpush1.msra.mxu0 %v1164_v58 }
 0x20f   :  { %v1180_v63 = vpop.eup %1179  ;;  %883 = vmatpush1.msra.mxu1 %v1178_v2  ;;  %813 = vmatprep.subr.mxu0 %v1162_v57 }
 0x210   :  { %v1182_v3 = vpop.eup %1181  ;;  %884 = vmatprep.subr.mxu1 %v1180_v63  ;;  %814 = vmatpush1.msra.mxu0 %v1160_v55 }
 0x211   :  { %v1184_v4 = vpop.eup %1183  ;;  %885 = vmatpush1.msra.mxu1 %v1182_v3  ;;  %815 = vmatprep.subr.mxu0 %v1158_v53 }
 0x212   :  { %v1186_v5 = vpop.eup %1185  ;;  %886 = vmatprep.subr.mxu1 %v1184_v4  ;;  %816 = vmatpush1.msra.mxu0 %v1156_v51 }
 0x213   :  { %v1188_v6 = vpop.eup %1187  ;;  %887 = vmatpush1.msra.mxu1 %v1186_v5  ;;  %817 = vmatprep.subr.mxu0 %v1154_v49 }
 0x214   :  { %v1190_v7 = vpop.eup %1189  ;;  %888 = vmatprep.subr.mxu1 %v1188_v6  ;;  %818 = vmatpush1.msra.mxu0 %v1152_v47 }
 0x215   :  { %v1192_v9 = vpop.eup %1191  ;;  %889 = vmatpush1.msra.mxu1 %v1190_v7  ;;  %819 = vmatprep.subr.mxu0 %v1150_v45 }
 0x216   :  { %v1194_v10 = vpop.eup %1193  ;;  %890 = vmatprep.subr.mxu1 %v1192_v9  ;;  %820 = vmatpush1.msra.mxu0 %v1605_v43 }
 0x217   :  { %891 = vmatpush1.msra.mxu1 %v1194_v10  ;;  %1040 = vmatmul.mubr.msk.f32.vlgmr.msra.gmra.mxu0 %vm785_vm2, %v44_v8 }
 0x218   :  { %1041 = vmatmul.mubr.msk.f32.vlgmr.msra.gmra.mxu1 %vm785_vm2, %v44_v8 }
 0x2d7   :  { %v855_v16 = vpop.f32.mrf.mxu0 }
 0x2d8   :  { %v926_v17 = vpop.f32.mrf.mxu1  ;;  %v856_v20 = vadd.f32 %v855_v16, %v783_v18 }
 0x2d9   :  { %v857_v19 = vpop.f32.mrf.mxu0  ;;  %v927_v24 = vadd.f32 %v926_v17, %v783_v18 }
 0x2da   :  { %v858_v21 = vadd.f32 %v857_v19, %v783_v18  ;;  %v928_v23 = vpop.f32.mrf.mxu1 }
 0x2db   :  { %v929_v25 = vadd.f32 %v928_v23, %v783_v18 }
 0x2dc   :  { %v935_v26 = vcombine.low %v856_v20, %v858_v21 }
 0x2dd   :  { %v936_v27 = vcombine.low %v927_v24, %v929_v25 }
 0x2de   :  { %v943_v28 = vrot.slane %v935_v26, %v942_v22 }
 0x2df   :  { %v950_v29 = vrot.slane %v936_v27, %v942_v22 }
 0x2e1   :  { %v951_v30 = vcombine.low %v943_v28, %v950_v29 }
 0x2e3   :  { %953 = vst [vmem:[%s1626_s7] sm:$0xff] %v951_v30 }

</bundles_post_ra>
